<compile_context>
chip_gen: v6e
topology: v6e:2x2x1
jax: 0.10.0
libtpu: 0.0.40
codegen_flags: <defaults>
</compile_context>

<pallas_src>
import functools

import jax
import jax.numpy as jnp
from jax.experimental import pallas as pl
from jax.experimental.pallas import tpu as pltpu


_MIN_GRID_STEPS = 8  # keep a few grid steps for megacore sharding / pipelining


# --------------------------------------------------------------------------
# Small helpers
# --------------------------------------------------------------------------
def _round_up(v: int, m: int) -> int:
    return -(-v // m) * m


def _cdiv(a: int, b: int) -> int:
    return -(-a // b)


@functools.lru_cache(maxsize=None)
def _vmem_config():
    """(tile budget for in+out double buffers, scoped vmem_limit_bytes)."""
    cap = 64 * 1024 * 1024
    try:
        cap = int(pltpu.get_tpu_info().vmem_capacity_bytes)
    except Exception:
        pass
    if cap >= 100 * 1024 * 1024:            # v5e / v6e: 128 MiB physical VMEM
        return 64 * 1024 * 1024, 96 * 1024 * 1024
    return 24 * 1024 * 1024, 48 * 1024 * 1024   # v7x: 64 MiB physical VMEM


def _sublane_multiple(dtype) -> int:
    itemsize = jnp.dtype(dtype).itemsize
    return 8 * max(1, 4 // itemsize)        # f32 -> 8, bf16 -> 16, int8/fp8 -> 32


def _canonical_power(power):
    """power=2.0/3.0 etc. are treated as integers (multiply path, not exp+log)."""
    pf = float(power)
    if pf.is_integer():
        return int(pf)
    return pf


def _int_pow(x, p: int):
    """x**p for integer p >= 1 via exponentiation-by-squaring (VPU muls only)."""
    acc = None
    base = x
    e = int(p)
    while e > 0:
        if e & 1:
            acc = base if acc is None else acc * base
        e >>= 1
        if e:
            base = base * base
    return acc


def _cost(total_elems: int, rows: int, itemsize: int, power):
    if isinstance(power, int):
        trans = rows                         # one rsqrt / s**(-1/p) per row
    else:
        trans = 2 * total_elems + rows       # per-element exp+log for jnp.power
    return pl.CostEstimate(
        flops=3 * total_elems,
        transcendentals=trans,
        bytes_accessed=2 * total_elems * itemsize,
    )


# --------------------------------------------------------------------------
# 2D path: rows x D, reduce over the (naturally lane-dense) last axis
# --------------------------------------------------------------------------
def _normalize_2d_kernel(x_ref, o_ref, *, power):
    x = x_ref[...]
    xf = x.astype(jnp.float32)
    if power == 2:
        s = jnp.sum(xf * xf, axis=-1, keepdims=True)    # VPU mul + lane reduce
        inv = jax.lax.rsqrt(s)                          # per-row, EUP slot
    else:
        if isinstance(power, int) and power >= 1:
            xp = _int_pow(xf, power)                    # no exp/log on the tile
        else:
            xp = jnp.power(xf, float(power))
        s = jnp.sum(xp, axis=-1, keepdims=True)
        inv = jnp.power(s, -1.0 / power)                # fold pow(1/p) + divide
    # Multiply in f32, cast the product once (never cast inv to the input dtype).
    o_ref[...] = (xf * inv).astype(o_ref.dtype)


def _pick_tile_n(n: int, d: int, dtype, budget: int) -> int:
    """Largest row tile fitting the VMEM budget, capped to keep >= ~8 grid steps."""
    itemsize = jnp.dtype(dtype).itemsize
    sub = _sublane_multiple(dtype)
    bytes_per_row = 4 * d * itemsize                    # (in + out) x double buffer
    tile = max(sub, (budget // max(1, bytes_per_row)) // sub * sub)
    steps_cap = _round_up(max(1, _cdiv(n, _MIN_GRID_STEPS)), sub)
    tile = min(tile, steps_cap)                         # keep several grid steps
    tile = min(tile, _round_up(n, sub))                 # don't exceed the array
    return max(sub, tile)


def _normalize_2d(x: jax.Array, power) -> jax.Array:
    n, d = x.shape
    budget, limit = _vmem_config()
    itemsize = jnp.dtype(x.dtype).itemsize
    sub = _sublane_multiple(x.dtype)

    # Wide-D overflow: even a minimal (sub, d) tile doesn't fit -> split D.
    if 4 * sub * d * itemsize > budget:
        tile_d = max(128, (budget // (4 * sub * itemsize)) // 128 * 128)
        return _normalize_2d_split(x, power, tile_n=sub, tile_d=tile_d)

    tile_n = _pick_tile_n(n, d, x.dtype, budget)
    kernel = functools.partial(_normalize_2d_kernel, power=power)
    return pl.pallas_call(
        kernel,
        out_shape=jax.ShapeDtypeStruct((n, d), x.dtype),
        grid_spec=pltpu.PrefetchScalarGridSpec(
            num_scalar_prefetch=0,
            grid=(pl.cdiv(n, tile_n),),
            in_specs=[pl.BlockSpec((tile_n, d), lambda i: (i, 0))],
            out_specs=pl.BlockSpec((tile_n, d), lambda i: (i, 0)),
        ),
        compiler_params=pltpu.CompilerParams(
            dimension_semantics=("parallel",),
            vmem_limit_bytes=limit,
        ),
        cost_estimate=_cost(n * d, n, itemsize, power),
    )(x)


# --------------------------------------------------------------------------
# 2D wide-D fallback: two passes (D-split norm accumulation, then rescale)
# --------------------------------------------------------------------------
def _rownorm_split_kernel(x_ref, inv_ref, acc_ref, *, power, d_total):
    k = pl.program_id(1)

    @pl.when(k == 0)
    def _():
        acc_ref[...] = jnp.zeros_like(acc_ref)

    x = x_ref[...]
    xf = x.astype(jnp.float32)
    tile_d = x.shape[-1]
    col = k * tile_d + jax.lax.broadcasted_iota(jnp.int32, x.shape, 1)
    in_bounds = col < d_total
    xf = jnp.where(in_bounds, xf, 0.0)
    if power == 2:
        part = xf * xf
    elif isinstance(power, int) and power >= 1:
        part = _int_pow(xf, power)
    else:
        part = jnp.power(xf, float(power))
    part = jnp.where(in_bounds, part, 0.0)
    acc_ref[...] += jnp.sum(part, axis=-1, keepdims=True)

    @pl.when(k == pl.num_programs(1) - 1)
    def _():
        s = acc_ref[...]
        if power == 2:
            inv_ref[...] = jax.lax.rsqrt(s)
        else:
            inv_ref[...] = jnp.power(s, -1.0 / power)


def _scale_split_kernel(x_ref, inv_ref, o_ref):
    o_ref[...] = (x_ref[...].astype(jnp.float32) * inv_ref[...]).astype(o_ref.dtype)


def _normalize_2d_split(x: jax.Array, power, *, tile_n: int, tile_d: int) -> jax.Array:
    n, d = x.shape
    _, limit = _vmem_config()
    nt, kt = pl.cdiv(n, tile_n), pl.cdiv(d, tile_d)

    inv = pl.pallas_call(
        functools.partial(_rownorm_split_kernel, power=power, d_total=d),
        out_shape=jax.ShapeDtypeStruct((n, 1), jnp.float32),
        grid_spec=pltpu.PrefetchScalarGridSpec(
            num_scalar_prefetch=0,
            grid=(nt, kt),
            in_specs=[pl.BlockSpec((tile_n, tile_d), lambda i, k: (i, k))],
            out_specs=pl.BlockSpec((tile_n, 1), lambda i, k: (i, 0)),
            scratch_shapes=[pltpu.VMEM((tile_n, 1), jnp.float32)],
        ),
        compiler_params=pltpu.CompilerParams(
            dimension_semantics=("parallel", "arbitrary"),
            vmem_limit_bytes=limit,
        ),
    )(x)

    return pl.pallas_call(
        _scale_split_kernel,
        out_shape=jax.ShapeDtypeStruct((n, d), x.dtype),
        grid_spec=pltpu.PrefetchScalarGridSpec(
            num_scalar_prefetch=0,
            grid=(nt, kt),
            in_specs=[pl.BlockSpec((tile_n, tile_d), lambda i, k: (i, k)),
                      pl.BlockSpec((tile_n, 1), lambda i, k: (i, 0))],
            out_specs=pl.BlockSpec((tile_n, tile_d), lambda i, k: (i, k)),
        ),
        compiler_params=pltpu.CompilerParams(
            dimension_semantics=("parallel", "parallel"),
            vmem_limit_bytes=limit,
        ),
    )(x, inv)


# --------------------------------------------------------------------------
# ND path (NCHW / NCL / ...): native layout, reduce over the channel axis
# --------------------------------------------------------------------------
def _normalize_nd_kernel(x_ref, o_ref, *, power):
    x = x_ref[...]                                    # (1, C, th, tw)
    xf = x.astype(jnp.float32)
    if power == 2:
        s = jnp.sum(xf * xf, axis=1, keepdims=True)   # C-1 VPU adds across vregs
        inv = jax.lax.rsqrt(s)
    else:
        if isinstance(power, int) and power >= 1:
            xp = _int_pow(xf, power)
        else:
            xp = jnp.power(xf, float(power))
        s = jnp.sum(xp, axis=1, keepdims=True)
        inv = jnp.power(s, -1.0 / power)
    o_ref[...] = (xf * inv).astype(o_ref.dtype)       # broadcast back over C


def _pick_tile_hw(c: int, m: int, w: int, itemsize: int, budget: int, n_batch: int):
    per_elem = 4 * c * itemsize                       # (in + out) x double buffer
    max_elems = max(1, budget // per_elem)
    # Lane (last) dim: keep it as dense as possible.
    if w <= max_elems:
        tw = w
    else:
        tw = max(128, (max_elems // 128) * 128)
    rem = max(1, max_elems // tw)
    if m <= rem:
        th = m
    else:
        th = max(8, (rem // 8) * 8)
    # Make sure the grid has at least 2 steps (v7x has 2 TensorCores).
    if n_batch * _cdiv(w, tw) < 2 and th >= m and m > 8:
        th = max(8, _round_up(_cdiv(m, 2), 8))
    return th, tw


def _normalize_nd(x: jax.Array, power) -> jax.Array:
    orig_shape = x.shape
    nb, c = x.shape[0], x.shape[1]
    rest = x.shape[2:]
    w = rest[-1]
    m = 1
    for s in rest[:-1]:
        m *= s
    x4 = x.reshape(nb, c, m, w)                       # contiguous collapse, no transpose

    budget, limit = _vmem_config()
    itemsize = jnp.dtype(x.dtype).itemsize

    # Pathologically huge channel counts: a minimal (1, C, 8, 128) block won't fit.
    if 4 * c * min(m, 8) * min(w, 128) * itemsize > budget:
        # TODO(synk): add a channel-split two-pass native-layout path to avoid this transpose.
        xt = jnp.moveaxis(x, 1, -1)
        flat = xt.reshape(-1, c)
        out = _normalize_2d(flat, power)
        return jnp.moveaxis(out.reshape(xt.shape), -1, 1)

    th, tw = _pick_tile_hw(c, m, w, itemsize, budget, nb)
    grid = (nb, pl.cdiv(m, th), pl.cdiv(w, tw))
    total = nb * c * m * w
    kernel = functools.partial(_normalize_nd_kernel, power=power)

    out4 = pl.pallas_call(
        kernel,
        out_shape=jax.ShapeDtypeStruct((nb, c, m, w), x.dtype),
        grid_spec=pltpu.PrefetchScalarGridSpec(
            num_scalar_prefetch=0,
            grid=grid,
            in_specs=[pl.BlockSpec((1, c, th, tw), lambda b, i, j: (b, 0, i, j))],
            out_specs=pl.BlockSpec((1, c, th, tw), lambda b, i, j: (b, 0, i, j)),
        ),
        compiler_params=pltpu.CompilerParams(
            dimension_semantics=("parallel", "parallel", "parallel"),
            vmem_limit_bytes=limit,
        ),
        cost_estimate=_cost(total, total // c, itemsize, power),
    )(x4)
    return out4.reshape(orig_shape)


# --------------------------------------------------------------------------
# Public entry point
# --------------------------------------------------------------------------
def normalize(x: jax.Array, power=2) -> jax.Array:
    """Pallas equivalent of Normalize(power).forward(x): normalize over dim 1."""
    assert x.ndim >= 2, "Normalize requires at least 2 dims (reduces over dim 1)"
    power = _canonical_power(power)
    if x.ndim == 2:
        return _normalize_2d(x, power)
    return _normalize_nd(x, power)


if __name__ == "__main__":
    key = jax.random.PRNGKey(0)
    k1, k2, k3 = jax.random.split(key, 3)

    def ref_normalize(xv, p):
        s = jnp.sum(jnp.power(xv, p), axis=1, keepdims=True)
        return xv / jnp.power(s, 1.0 / p)

    # 2D embeddings (batch, feat_dim): lane-dense reduce path.
    x2d = jax.random.normal(k1, (16, 128), dtype=jnp.float32)
    out2d = jax.block_until_ready(normalize(x2d, power=2))
    assert out2d.shape == x2d.shape and out2d.dtype == x2d.dtype
    assert jnp.allclose(out2d, ref_normalize(x2d, 2), atol=1e-5, rtol=1e-5)

    # NCHW conv features: native-layout channel reduce (no HBM transposes).
    x4d = jax.random.normal(k2, (2, 4, 16, 16), dtype=jnp.float32)
    out4d = jax.block_until_ready(normalize(x4d, power=2))
    assert out4d.shape == x4d.shape
    assert jnp.allclose(out4d, ref_normalize(x4d, 2), atol=1e-5, rtol=1e-5)

    # Integer power path; power=3.0 must route to the same multiply path.
    x3 = jnp.abs(jax.random.normal(k3, (16, 128), dtype=jnp.float32)) + 0.1
    ref3 = ref_normalize(x3, 3)
    out3 = jax.block_until_ready(normalize(x3, power=3))
    out3f = jax.block_until_ready(normalize(x3, power=3.0))
    assert jnp.allclose(out3, ref3, atol=1e-4, rtol=1e-4)
    assert jnp.allclose(out3f, ref3, atol=1e-4, rtol=1e-4)

    # Two-pass wide-D structure (forced small tile_d to exercise the code path).
    xw = jax.random.normal(k1, (16, 256), dtype=jnp.float32)
    outw = jax.block_until_ready(_normalize_2d_split(xw, 2, tile_n=8, tile_d=128))
    assert jnp.allclose(outw, ref_normalize(xw, 2), atol=1e-5, rtol=1e-5)

    print("KERNEL_OK")
</pallas_src>

<mosaic_0001>
module attributes {stable_mosaic.version = 11 : i64} {
  func.func @_normalize_2d_kernel(%arg0: i32, %arg1: memref<8x128xf32, #tpu.memory_space<vmem>>, %arg2: memref<8x128xf32, #tpu.memory_space<vmem>>) attributes {dimension_semantics = [#tpu.dimension_semantics<parallel>], iteration_bounds = array<i64: 2>, scalar_prefetch = 0 : i64, scratch_operands = 0 : i64, tpu.core_type = #tpu.core_type<tc>, window_params = [{transform_indices = @transform_0, window_bounds = array<i64: 8, 128>}, {transform_indices = @transform_1, window_bounds = array<i64: 8, 128>}]} {
    %c0 = arith.constant 0 : index
    %c0_0 = arith.constant 0 : index
    %0 = vector.load %arg1[%c0, %c0_0] : memref<8x128xf32, #tpu.memory_space<vmem>>, vector<8x128xf32>
    %1 = arith.mulf %0, %0 : vector<8x128xf32>
    %cst = arith.constant dense<0.000000e+00> : vector<8xf32>
    %2 = vector.multi_reduction <add>, %1, %cst [1] : vector<8x128xf32> to vector<8xf32>
    %3 = vector.shape_cast %2 : vector<8xf32> to vector<8x1xf32>
    %4 = math.rsqrt %3 : vector<8x1xf32>
    %5 = vector.broadcast %4 : vector<8x1xf32> to vector<8x128xf32>
    %6 = arith.mulf %0, %5 : vector<8x128xf32>
    %c0_1 = arith.constant 0 : index
    %c0_2 = arith.constant 0 : index
    %7 = vector.load %arg2[%c0_1, %c0_2] : memref<8x128xf32, #tpu.memory_space<vmem>>, vector<8x128xf32>
    tpu.vector_store %arg2[%c0_1, %c0_2], %6 {strides = array<i32>} : memref<8x128xf32, #tpu.memory_space<vmem>>, vector<8x128xf32>,
    return
  }
  func.func @transform_0(%arg0: i32) -> (i32, i32) {
    %c0_i32 = arith.constant 0 : i32
    %c0_i32_0 = arith.constant 0 : i32
    return %arg0, %c0_i32 : i32, i32
  }
  func.func @transform_1(%arg0: i32) -> (i32, i32) {
    %c0_i32 = arith.constant 0 : i32
    %c0_i32_0 = arith.constant 0 : i32
    return %arg0, %c0_i32 : i32, i32
  }
}

</mosaic_0001>

<bundles_post_ra>
// kernel: tpu_custom_call.1
= control target key start
LH: loop header
LB: loop body
LE: loop exit
PB: predicated region body
PF: predicated region fallthrough
CT: control target
= control target key end

     0   :  { %6 = vsyncpa [#allocation3], 0  ;;  %s530_s0 = inlined_call_operand.hbm [shape: f32[16,128], index: 0, kind: input, shape index: {}]   ;;  %s531_s1 = inlined_call_operand.hbm [shape: f32[16,128], index: 1, kind: output, shape index: {}]  }
   0x1   :  { %8 = vsyncpa [#allocation3 + $0x1], 0 }
   0x2   :  { %9 = vsyncpa [#allocation4], 0 }
   0x3   :  { %11 = vsyncpa [#allocation4 + $0x1], 0  ;;  %s389_s6 = smov 0   ;;  %s391_s7 = smov 0  }
   0x4   :  { %s393_s8 = smov 0   ;;  %s395_s9 = smov 0  }
   0x5 LB: > { %s410_s10 = sadd.s32 4294967295, %s375_s9   ;;  %s223_s11 = sadd.s32 4294967294, %s375_s9   ;;  %s375_s9 = sphi %s395_s9, %s548_s9   ;;  %s371_s8 = sphi %s393_s8, %s547_s8   ;;  %s367_s7 = sphi %s391_s7, %s546_s7   ;;  %s363_s6 = sphi %s389_s6, %s545_s6  }
   0x6   : > { %s414_s12 = sadd.s32 1, %s375_s9   ;;  %s24_s13 = sadd.s32 1, %s371_s8 }
   0x7   : > { %s21_s14 = ssub.s32 %s375_s9, %s414_s12  ;;  %p31_p0 = scmp.ne.s32.totalorder %s371_s8, %s367_s7 }
   0x8   : > { %p22_p1 = scmp.eq.s32.totalorder %s21_s14, 0  ;;  %p32_p2 = scmp.eq.s32.totalorder %s375_s9, 0 }
   0x9   : > { %p37_p3 = scmp.ne.s32.totalorder %s367_s7, %s363_s6  ;;  %p38_p4 = scmp.eq.s32.totalorder %s410_s10, 0 }
   0xa   : > { %s426_s15 = scalar_select %p22_p1, %s371_s8, %s24_s13  }
   0xb   : > { %p428_p5 = por %p32_p2, %p31_p0  ;;  %p432_p6 = por %p38_p4, %p37_p3 }
   0xc   : > { %p61_p7 = scmp.eq.s32.totalorder %s410_s10, 1  ;;  %p67_p8 = scmp.eq.s32.totalorder %s223_s11, 1 }
   0xd   : > { %s535_s17 = scalar_select %p432_p6, 1, 0 }
   0xe   : > { %p247_p10 = scmp.lt.s32.totalorder %s375_s9, 2  ;;  %p439_p11 = por %p61_p7, %p31_p0 }
   0xf   : > { %p443_p12 = por %p67_p8, %p37_p3  ;;  %s87_s20 = sand.u32 1, %s371_s8  }
  0x10   : > { %s536_s18 = scalar_select %p439_p11, 1, 0 }
  0x11   : > { %s537_s19 = scalar_select %p443_p12, 1, 0 }
  0x12   : > { %s227_s21 = sshll.u32 %s375_s9, 7  ;;  %s226_s22 = sshll.u32 %s87_s20, 3 }
  0x13   : > { %s452_s25 = scalar_lea.hbm %s530_s0, %s227_s21  ;;  %s91_s26 = scalar_lea.vmem [#allocation2], %s226_s22 }
  0x14   : > { %s98_s27 = sshll.u32 %s91_s26, 4  ;;  %p456_p13 = pnand %p247_p10, %p428_p5  ;;  %s460_s27 = int_to_ptr.vmem [resolvable:$true] %s98_s27 }
  0x15   : > { %s88_s29 = scalar_lea.sflag [#allocation3], %s87_s20  ;;  %s283_s30 = scalar_lea.hbm %s452_s25, 128 }
  0x16   : > { %p284_p2 = scmp.ne.s32.totalorder %s452_s25, %s283_s30  ;;  %p285_p3 = pneg %p456_p13 }
  0x17   : > { %s288_s4 = scalar_lea.hbm %s530_s0, 256  ;;  %p289_p5 = scmp.lt.s32.totalorder %s452_s25, %s530_s0 }
  0x18   : > { %p286_p4 = pnand %p285_p3, %p284_p2  ;;  %p290_p8 = scmp.lt.s32.totalorder %s288_s4, %s283_s30 }
  0x1a   : > { %p287_p7 = pneg %p286_p4  ;;  %p291_p10 = por %p290_p8, %p289_p5 }
  0x1c   : > { %p292_p9 = pnand %p291_p10, %p287_p7 }
  0x1e   : > { %295 = shalt.err (!%p292_p9)
}
  0x1f   : > { %s296_s13 = scalar_lea.vmem %s460_s27, 128  ;;  %s377_s14 = smov [#allocation2]  }
  0x20   : > { %p297_p0 = scmp.ne.s32.totalorder %s460_s27, %s296_s13  ;;  %s301_s16 = sshll.u32 %s377_s14, 4  ;;  %s302_s16 = int_to_ptr.vmem [resolvable:$false] %s301_s16 }
  0x21   : > { %s303_s20 = scalar_lea.vmem %s302_s16, 256  ;;  %p304_p4 = scmp.lt.s32.totalorder %s460_s27, %s302_s16 }
  0x22   : > { %p299_p1 = pnand %p297_p0, %p285_p3  ;;  %p305_p12 = scmp.lt.s32.totalorder %s303_s20, %s296_s13 }
  0x24   : > { %p300_p2 = pneg %p299_p1  ;;  %p306_p11 = por %p305_p12, %p304_p4 }
  0x26   : > { %p307_p6 = pnand %p306_p11, %p300_p2 }
  0x28   : > { %310 = shalt.err (!%p307_p6)
}
  0x29   : > { %242 = dma.hbm_to_vmem [thread:$0]  (!%p456_p13), %s452_s25, 128, %s460_s27, %s88_s29  }
  0x2a   : > { %p539_p9 = scmp.lt.s32.totalorder %s375_s9, 3  ;;  %p540_p7 = scmp.ge.s32.totalorder %s375_s9, 1 }
  0x2c   : > { %p104_p0 = pnand %p540_p7, %p539_p9 }
  0x2d   : > { %s487_s21 = sand.u32 (!%p104_p0), 1, %s367_s7   ;;  %p541_p6 = scmp.ne.s32.totalorder (!%p104_p0), %s535_s17, 0 }
  0x2e   : > { %107 = sbr.rel (%p104_p0) target bundleno = 222 (0xde), region = 24  ;;  %s229_s22 = sshll.u32 (!%p104_p0), %s487_s21, 3 }
  0x2f   : > { %s110_s23 = scalar_lea.sflag (!%p104_p0), [#allocation3], %s487_s21  ;;  %s113_s24 = scalar_lea.vmem (!%p104_p0), [#allocation2], %s229_s22 }
  0x33   : > { %354 = dma.done.wait (%p541_p6), %s110_s23, 128  }
  0x34   : > { %356 = vsyncadd (%p541_p6), %s110_s23, 4294967168  ;;  %v132_v0 = vld [vmem:[%s113_s24] sm:$0xff]  ;;  %s232_s25 = sshll.u32 %s410_s10, 7  ;;  %s131_s26 = scalar_lea.vmem [#allocation5], %s229_s22 }
  0x35   : > { %v133_v1 = vmul.f32 %v132_v0, %v132_v0  ;;  %s153_s27 = sshll.u32 %s131_s26, 4  ;;  %s151_s30 = scalar_lea.hbm %s531_s1, %s232_s25  ;;  %s154_s27 = int_to_ptr.vmem [resolvable:$true] %s153_s27 }
  0x36   : > { %s140_s17 = scalar_lea.sflag [#allocation4], %s487_s21  ;;  %s311_s2 = scalar_lea.vmem %s154_s27, 128 }
  0x37   : > { %134 = vadd.xlane.f32.xlu0 %v133_v1  ;;  %p312_p11 = scmp.ne.s32.totalorder %s154_s27, %s311_s2  ;;  %p542_p12 = scmp.ne.s32.totalorder %s536_s18, 0 }
  0x38   : > { %s378_s3 = smov [#allocation5]  }
  0x39   : > { %p313_p13 = pnand %p312_p11, %p542_p12  ;;  %s315_s4 = sshll.u32 %s378_s3, 4  ;;  %s316_s4 = int_to_ptr.vmem [resolvable:$false] %s315_s4 }
  0x3a   : > { %s317_s10 = scalar_lea.vmem %s316_s4, 256  ;;  %p318_p3 = scmp.lt.s32.totalorder %s154_s27, %s316_s4 }
  0x3b   : > { %p314_p1 = pneg %p313_p13  ;;  %p319_p5 = scmp.lt.s32.totalorder %s317_s10, %s311_s2 }
  0x3d   : > { %p320_p8 = por %p319_p5, %p318_p3 }
  0x3f   : > { %p321_p10 = pnand %p320_p8, %p314_p1 }
  0xc0   : > { %v135_v2 = vpop.xlane.xlu0 %134 }
  0xc1   : > { %281 = vrsqrt.f32 %v135_v2 }
  0xce   : > { %v282_v3 = vpop.eup %281 }
  0xcf   : > { %v137_v4 = vmul.f32 %v282_v3, %v132_v0 }
  0xd1   : > { %138 = vst [vmem:[%s131_s26] sm:$0xff] %v137_v4 }
  0xd2   : > { %324 = shalt.err (!%p321_p10)
}
  0xd3   : > { %s325_s5 = scalar_lea.hbm %s151_s30, 128  ;;  %s329_s14 = scalar_lea.hbm %s531_s1, 256 }
  0xd4   : > { %p326_p2 = scmp.ne.s32.totalorder %s151_s30, %s325_s5  ;;  %p330_p7 = scmp.lt.s32.totalorder %s151_s30, %s531_s1 }
  0xd5   : > { %p331_p0 = scmp.lt.s32.totalorder %s329_s14, %s325_s5 }
  0xd6   : > { %p327_p4 = pnand %p326_p2, %p542_p12 }
  0xd7   : > { %p332_p6 = por %p331_p0, %p330_p7 }
  0xd8   : > { %p328_p9 = pneg %p327_p4 }
  0xda   : > { %p333_p11 = pnand %p332_p6, %p328_p9 }
  0xdc   : > { %336 = shalt.err (!%p333_p11)
}
  0xdd   : > { %237 = dma.vmem_to_hbm [thread:$0]  (%p542_p12), %s154_s27, 128, %s151_s30, %s140_s17  }
  0xde PF: > { %s165_s21 = sand.u32 1, %s363_s6   ;;  %p543_p13 = scmp.ne.s32.totalorder %s537_s19, 0 }
  0xdf   : > { %p544_p1 = scmp.ge.s32.totalorder %s375_s9, 2  ;;  %s166_s22 = scalar_lea.sflag [#allocation4], %s165_s21 }
  0xe1   : > { %p244_p3 = pnand %p544_p1, %p543_p13 }
  0xe3   : > { %p245_p5 = pneg %p244_p3 }
  0xe5   : > { %358 = dma.done.wait (%p245_p5), %s166_s22, 128  }
  0xe6   : > { %360 = vsyncadd (%p245_p5), %s166_s22, 4294967168  ;;  %p14_p8 = scmp.ge.s32.totalorder %s414_s12, 4   ;;  %s545_s6 = smov %s367_s7 }
  0xe7   : > { %s546_s7 = smov %s371_s8  ;;  %s547_s8 = smov %s426_s15 }
  0xe8   : > { %s548_s9 = smov %s414_s12  ;;  %16 = sbr.rel (!%p14_p8) target bundleno = 5 (0x5), region = 69 }
  0xed   :  { %171 = vsyncpa [#allocation3], 1 }
  0xee   :  { %173 = vsyncpa [#allocation3 + $0x1], 1 }
  0xef   :  { %174 = vsyncpa [#allocation4], 1 }
  0xf0   :  { %176 = vsyncpa [#allocation4 + $0x1], 1 }

</bundles_post_ra>
